<compile_context>
chip_gen: v7x
topology: tpu7x:2x2x1
jax: 0.10.0
libtpu: 0.0.40
codegen_flags: <defaults>
</compile_context>

<pallas_src>
import functools

import jax
import jax.numpy as jnp
from jax.experimental import pallas as pl
from jax.experimental.pallas import tpu as pltpu


_N_VEC_ROWS = 7  # bd, rs1, rt1, b1, wf, w2f, c


# ----------------------------------------------------------------------------
# Kernel
# ----------------------------------------------------------------------------
def classifier_kernel(x_ref, pk_ref, out_ref, *, input_dim, p0, hidden):
    # pk_ref rows (all slice starts are sublane-aligned by construction):
    #   [0 : input_dim]        downsampling_linear weight, bn1 folded   (in, H)
    #   [input_dim : p0]       zero padding (sublane alignment)
    #   [p0 : p0+H]            res.linear1 weight, res.bn2 folded       (H, H)
    #   [p0+H : p0+H+7]        per-feature vectors                      (7, H)
    x = x_ref[...]

    wd = pk_ref[0:input_dim, :]                                # static ref slice
    w1 = pk_ref[p0:p0 + hidden, :]
    vec = pk_ref[p0 + hidden:p0 + hidden + _N_VEC_ROWS, :]

    bd  = vec[0:1, :]    # downsampling bias (bn1 folded)
    rs1 = vec[1:2, :]    # res.bn1 scale
    rt1 = vec[2:3, :]    # res.bn1 shift
    b1  = vec[3:4, :]    # linear1 bias (res.bn2 folded)
    wf  = vec[4:5, :]    # final_layer weight row
    w2f = vec[5:6, :]    # res.linear2 weight pre-contracted with final layer
    c   = vec[6:7, 0:1]  # scalar: b2 @ wf + bf

    # downsampling_linear + bn1 (folded) + relu   (dropout = identity, eval)
    h = jnp.maximum(jnp.dot(x, wd, preferred_element_type=jnp.float32) + bd, 0.0)

    # ResidualBlock: bn1 -> relu -> linear1(+bn2 folded) -> relu  (dropout = id)
    o = jnp.maximum(h * rs1 + rt1, 0.0)
    o = jnp.maximum(jnp.dot(o, w1, preferred_element_type=jnp.float32) + b1, 0.0)

    # linear2 + residual add + final_layer, algebraically pre-contracted:
    #   (o @ w2 + b2 + h) @ wf + bf  ==  sum(o*w2f + h*wf, -1) + c
    # Two VPU muls + one XLU lane-reduce replace an (H,H) MXU matmul on the
    # serial chain (exact only in eval mode).
    out_ref[...] = jnp.sum(o * w2f + h * wf, axis=-1, keepdims=True) + c


# ----------------------------------------------------------------------------
# One-time parameter folding / packing (model-load time, NOT per call)
# ----------------------------------------------------------------------------
def _bn_fold(bn, eps=1e-5):
    gamma, beta, rm, rv = bn
    scale = gamma / jnp.sqrt(rv + eps)
    shift = beta - rm * scale
    return scale, shift


def fold_classifier_params(p, eps=1e-5):
    """Fold eval-mode BN into adjacent Linears, pre-contract w2 with the rank-1
    final layer, and pack everything into a single VMEM operand.

    Called once at model-load time; keeps ~10 tiny XLA ops off the per-call
    hot path (the kernel itself is sub-microsecond at these shapes)."""
    input_dim, hidden = p["wd"].shape

    s1, t1 = _bn_fold(p["bn1"], eps)      # classifier.bn1
    rs1, rt1 = _bn_fold(p["rbn1"], eps)   # res_block1.bn1 (stays in-kernel)
    rs2, rt2 = _bn_fold(p["rbn2"], eps)   # res_block1.bn2

    # Fold bn1 into downsampling_linear, res.bn2 into res.linear1.
    wd_f = p["wd"] * s1[None, :]
    bd_f = p["bd"][0] * s1 + t1
    w1_f = p["w1"] * rs2[None, :]
    b1_f = p["b1"][0] * rs2 + rt2

    # Pre-contract res.linear2 with the rank-1 final layer (eval-mode exact).
    wf_row = p["wf"][:, 0]                               # (H,)
    w2f_row = (p["w2"] @ p["wf"])[:, 0]                  # (H,)
    c = jnp.dot(p["b2"][0], wf_row) + p["bf"][0, 0]      # scalar

    vecs = jnp.stack(
        [bd_f, rs1, rt1, b1_f, wf_row, w2f_row,
         jnp.full((hidden,), c, jnp.float32)],
        axis=0)                                          # (7, H)

    # Pack into ONE operand; sublane-align w1_f's start offset.
    p0 = ((input_dim + 7) // 8) * 8
    wd_pad = jnp.pad(wd_f, ((0, p0 - input_dim), (0, 0)))
    pk = jnp.concatenate([wd_pad, w1_f, vecs], axis=0).astype(jnp.float32)

    dims = (int(input_dim), int(p0), int(hidden))
    return pk, dims


# ----------------------------------------------------------------------------
# Forward wrapper (hot path: just the pallas_call)
# ----------------------------------------------------------------------------
@functools.partial(jax.jit, static_argnames=("dims",))
def classifier_forward(x, pk, *, dims):
    input_dim, p0, hidden = dims
    B = x.shape[0]

    kernel = functools.partial(
        classifier_kernel, input_dim=input_dim, p0=p0, hidden=hidden)

    flops = 2 * B * (input_dim * hidden + hidden * hidden + 2 * hidden)
    bytes_accessed = 4 * (x.size + pk.size + B)
    cost = pl.CostEstimate(flops=flops, transcendentals=0,
                           bytes_accessed=bytes_accessed)

    # Grid-less: both operands are single full-array blocks resident in VMEM.
    return pl.pallas_call(
        kernel,
        out_shape=jax.ShapeDtypeStruct((B, 1), jnp.float32),
        in_specs=[pl.BlockSpec(memory_space=pltpu.MemorySpace.VMEM)] * 2,
        out_specs=pl.BlockSpec(memory_space=pltpu.MemorySpace.VMEM),
        cost_estimate=cost,
    )(x, pk)


# ----------------------------------------------------------------------------
# Deterministic parameter construction (PyTorch-style init, eval-mode BN)
# ----------------------------------------------------------------------------
def _linear_init(key, fan_in, fan_out):
    # PyTorch nn.Linear default: U(-1/sqrt(fan_in), 1/sqrt(fan_in))
    kw, kb = jax.random.split(key)
    bound = 1.0 / jnp.sqrt(jnp.float32(fan_in))
    w = jax.random.uniform(kw, (fan_in, fan_out), jnp.float32, -bound, bound)
    b = jax.random.uniform(kb, (1, fan_out), jnp.float32, -bound, bound)
    return w, b


def _bn_state(key, hidden_dim):
    # Random (but deterministic) eval-mode BN statistics so the weight-fold is
    # actually exercised by the correctness check.
    kg, kb, km, kv = jax.random.split(key, 4)
    gamma = 1.0 + 0.1 * jax.random.normal(kg, (hidden_dim,), jnp.float32)
    beta = 0.1 * jax.random.normal(kb, (hidden_dim,), jnp.float32)
    rm = 0.1 * jax.random.normal(km, (hidden_dim,), jnp.float32)
    rv = 1.0 + 0.1 * jax.random.uniform(kv, (hidden_dim,), jnp.float32)
    return gamma, beta, rm, rv


def make_params(key, input_dim, hidden_dim):
    ks = jax.random.split(key, 7)
    wd, bd = _linear_init(ks[0], input_dim, hidden_dim)
    w1, b1 = _linear_init(ks[1], hidden_dim, hidden_dim)
    w2, b2 = _linear_init(ks[2], hidden_dim, hidden_dim)
    wf, bf = _linear_init(ks[3], hidden_dim, 1)
    return dict(
        wd=wd, bd=bd, w1=w1, b1=b1, w2=w2, b2=b2, wf=wf, bf=bf,
        bn1=_bn_state(ks[4], hidden_dim),
        rbn1=_bn_state(ks[5], hidden_dim),
        rbn2=_bn_state(ks[6], hidden_dim),
    )


# Pure-JAX reference, unfolded (mirrors the PyTorch module in eval mode).
def classifier_ref(x, p):
    def bn_apply(v, bn, eps=1e-5):
        gamma, beta, rm, rv = bn
        return (v - rm) / jnp.sqrt(rv + eps) * gamma + beta

    h = x @ p["wd"] + p["bd"]
    h = bn_apply(h, p["bn1"])
    h = jnp.maximum(h, 0.0)
    residual = h
    o = bn_apply(h, p["rbn1"])
    o = jnp.maximum(o, 0.0)
    o = o @ p["w1"] + p["b1"]
    o = bn_apply(o, p["rbn2"])
    o = jnp.maximum(o, 0.0)
    o = o @ p["w2"] + p["b2"]
    o = o + residual
    return o @ p["wf"] + p["bf"]


if __name__ == "__main__":
    B, INPUT_DIM, HIDDEN_DIM = 8, 64, 32

    key = jax.random.PRNGKey(0)
    kx, kp = jax.random.split(key)
    x = jax.random.normal(kx, (B, INPUT_DIM), jnp.float32)
    params = make_params(kp, INPUT_DIM, HIDDEN_DIM)

    # One-time fold/pack (model-load time), then the per-call hot path.
    pk, dims = fold_classifier_params(params)
    pk = jax.block_until_ready(pk)

    out = classifier_forward(x, pk, dims=dims)
    out = jax.block_until_ready(out)

    ref = classifier_ref(x, params)
    assert out.shape == (B, 1)
    assert jnp.allclose(out, ref, atol=1e-3, rtol=1e-3), "mismatch vs reference"

    print("KERNEL_OK")
</pallas_src>

<mosaic_0001>
module attributes {stable_mosaic.version = 11 : i64} {
  func.func @classifier_kernel(%arg0: memref<8x64xf32, #tpu.memory_space<vmem>>, %arg1: memref<103x32xf32, #tpu.memory_space<vmem>>, %arg2: memref<8x1xf32, #tpu.memory_space<vmem>>) attributes {dimension_semantics = [], scalar_prefetch = 0 : i64, scratch_operands = 0 : i64, tpu.core_type = #tpu.core_type<tc>} {
    %c0 = arith.constant 0 : index
    %c0_0 = arith.constant 0 : index
    %0 = vector.load %arg0[%c0, %c0_0] : memref<8x64xf32, #tpu.memory_space<vmem>>, vector<8x64xf32>
    %c0_1 = arith.constant 0 : index
    %c0_2 = arith.constant 0 : index
    %1 = vector.load %arg1[%c0_1, %c0_2] : memref<103x32xf32, #tpu.memory_space<vmem>>, vector<64x32xf32>
    %c64 = arith.constant 64 : index
    %c0_3 = arith.constant 0 : index
    %2 = vector.load %arg1[%c64, %c0_3] : memref<103x32xf32, #tpu.memory_space<vmem>>, vector<32x32xf32>
    %c96 = arith.constant 96 : index
    %c0_4 = arith.constant 0 : index
    %3 = vector.load %arg1[%c96, %c0_4] : memref<103x32xf32, #tpu.memory_space<vmem>>, vector<7x32xf32>
    %4 = vector.extract_strided_slice %3 {offsets = [0, 0], sizes = [1, 32], strides = [1, 1]} : vector<7x32xf32> to vector<1x32xf32>
    %5 = vector.extract_strided_slice %3 {offsets = [1, 0], sizes = [1, 32], strides = [1, 1]} : vector<7x32xf32> to vector<1x32xf32>
    %6 = vector.extract_strided_slice %3 {offsets = [2, 0], sizes = [1, 32], strides = [1, 1]} : vector<7x32xf32> to vector<1x32xf32>
    %7 = vector.extract_strided_slice %3 {offsets = [3, 0], sizes = [1, 32], strides = [1, 1]} : vector<7x32xf32> to vector<1x32xf32>
    %8 = vector.extract_strided_slice %3 {offsets = [4, 0], sizes = [1, 32], strides = [1, 1]} : vector<7x32xf32> to vector<1x32xf32>
    %9 = vector.extract_strided_slice %3 {offsets = [5, 0], sizes = [1, 32], strides = [1, 1]} : vector<7x32xf32> to vector<1x32xf32>
    %10 = vector.extract_strided_slice %3 {offsets = [6, 0], sizes = [1, 1], strides = [1, 1]} : vector<7x32xf32> to vector<1x1xf32>
    %cst = arith.constant dense<0.000000e+00> : vector<8x32xf32>
    %11 = tpu.matmul %0, %1, %cst {dimension_numbers = #tpu.dot_dimension_numbers<[1], [0], [0], [1], [0, 0, 1, 1], [], []>} : vector<8x64xf32>, vector<64x32xf32>, vector<8x32xf32> -> vector<8x32xf32>
    %12 = vector.broadcast %4 : vector<1x32xf32> to vector<8x32xf32>
    %13 = arith.addf %11, %12 : vector<8x32xf32>
    %cst_5 = arith.constant 0.000000e+00 : f32
    %14 = vector.broadcast %cst_5 : f32 to vector<8x32xf32>
    %15 = arith.maximumf %13, %14 : vector<8x32xf32>
    %16 = vector.broadcast %5 : vector<1x32xf32> to vector<8x32xf32>
    %17 = arith.mulf %15, %16 : vector<8x32xf32>
    %18 = vector.broadcast %6 : vector<1x32xf32> to vector<8x32xf32>
    %19 = arith.addf %17, %18 : vector<8x32xf32>
    %cst_6 = arith.constant 0.000000e+00 : f32
    %20 = vector.broadcast %cst_6 : f32 to vector<8x32xf32>
    %21 = arith.maximumf %19, %20 : vector<8x32xf32>
    %cst_7 = arith.constant dense<0.000000e+00> : vector<8x32xf32>
    %22 = tpu.matmul %21, %2, %cst_7 {dimension_numbers = #tpu.dot_dimension_numbers<[1], [0], [0], [1], [0, 0, 1, 1], [], []>} : vector<8x32xf32>, vector<32x32xf32>, vector<8x32xf32> -> vector<8x32xf32>
    %23 = vector.broadcast %7 : vector<1x32xf32> to vector<8x32xf32>
    %24 = arith.addf %22, %23 : vector<8x32xf32>
    %cst_8 = arith.constant 0.000000e+00 : f32
    %25 = vector.broadcast %cst_8 : f32 to vector<8x32xf32>
    %26 = arith.maximumf %24, %25 : vector<8x32xf32>
    %27 = vector.broadcast %9 : vector<1x32xf32> to vector<8x32xf32>
    %28 = arith.mulf %26, %27 : vector<8x32xf32>
    %29 = vector.broadcast %8 : vector<1x32xf32> to vector<8x32xf32>
    %30 = arith.mulf %15, %29 : vector<8x32xf32>
    %31 = arith.addf %28, %30 : vector<8x32xf32>
    %cst_9 = arith.constant dense<0.000000e+00> : vector<8xf32>
    %32 = vector.multi_reduction <add>, %31, %cst_9 [1] : vector<8x32xf32> to vector<8xf32>
    %33 = vector.shape_cast %32 : vector<8xf32> to vector<8x1xf32>
    %34 = vector.broadcast %10 : vector<1x1xf32> to vector<8x1xf32>
    %35 = arith.addf %33, %34 : vector<8x1xf32>
    %c0_10 = arith.constant 0 : index
    %c0_11 = arith.constant 0 : index
    %36 = vector.load %arg2[%c0_10, %c0_11] : memref<8x1xf32, #tpu.memory_space<vmem>>, vector<8x1xf32>
    tpu.vector_store %arg2[%c0_10, %c0_11], %35 {strides = array<i32>} : memref<8x1xf32, #tpu.memory_space<vmem>>, vector<8x1xf32>,
    return
  }
}

</mosaic_0001>

<bundles_post_ra>
// kernel: classifier_forward.1
= control target key start
LH: loop header
LB: loop body
LE: loop exit
PB: predicated region body
PF: predicated region fallthrough
CT: control target
= control target key end

     0   :  { %v286_v0 = vmov 0.0|0.0   ;;  %vm287_vm0 = vmmov 0   ;;  %v288_v4 = vmov 0.0   ;;  %vm29_vm1 = vcmask 523264   ;;  %s351_s1 = inlined_call_operand.vmem [shape: f32[103,32], index: 1, kind: input, shape index: {}]   ;;  %s352_s0 = inlined_call_operand.vmem [shape: f32[8,64], index: 0, kind: input, shape index: {}]   ;;  %s353_s2 = inlined_call_operand.vmem [shape: f32[8,1], index: 2, kind: output, shape index: {}]  }
   0x1   :  { %265 = vmatprep.subr.bf16.mxu0 %v286_v0  ;;  %v12_v1 = vld [vmem:[%s351_s1] sm:$0xff]  ;;  %v13_v2 = vld [vmem:[%s351_s1 + $0x8] sm:$0xff]  ;;  %v14_v3 = vld [vmem:[%s351_s1 + $0x10] sm:$0xff]  ;;  %251 = vmatprep.mubr.msk.f32.mxu0 %vm287_vm0, %v288_v4  ;;  %v25_v21 = vlaneseq  ;;  %vm119_vm2 = vcmask 261120   ;;  %vm213_vm3 = vcmask 7168  }
   0x2   :  { %v266_v5 = vpack.c.bf16 %v13_v2, %v12_v1  ;;  %v15_v6 = vld [vmem:[%s351_s1 + $0x18] sm:$0xff]  ;;  %277 = vmatprep.subr.bf16.mxu1 %v286_v0  ;;  %262 = vmatprep.mubr.msk.f32.mxu1 %vm287_vm0, %v288_v4  ;;  %v16_v8 = vld [vmem:[%s351_s1 + $0x20] sm:$0xff]  ;;  %v17_v9 = vld [vmem:[%s351_s1 + $0x28] sm:$0xff] }
   0x3   :  { %v269_v7 = vpack.c.bf16 %v15_v6, %v14_v3  ;;  %v272_v10 = vpack.c.bf16 %v17_v9, %v16_v8  ;;  %v18_v11 = vld [vmem:[%s351_s1 + $0x30] sm:$0xff]  ;;  %v19_v12 = vld [vmem:[%s351_s1 + $0x38] sm:$0xff]  ;;  %v11_v14 = vld [vmem:[%s352_s0] sm:$0xff]  ;;  %v26_v22 = vshrl.u32 %v25_v21, 7 }
   0x4   :  { %267 = vmatpush3.bf16.msra.mxu0 %v266_v5  ;;  %v275_v13 = vpack.c.bf16 %v19_v12, %v18_v11  ;;  %v20_v15 = vld [vmem:[%s351_s1 + $0x40] sm:$0xff]  ;;  %v21_v16 = vld [vmem:[%s351_s1 + $0x48] sm:$0xff]  ;;  %v22_v18 = vld [vmem:[%s351_s1 + $0x50] sm:$0xff] }
   0x5   :  { %268 = vmatprep.subr.bf16.mxu0 %v286_v0  ;;  %v278_v17 = vpack.c.bf16 %v21_v16, %v20_v15  ;;  %v23_v19 = vld [vmem:[%s351_s1 + $0x58] sm:$0xff]  ;;  %v27_v23 = vsub.s32 0, %v26_v22  ;;  %v24_v24 = vld [vmem:[%s351_s1 + $0x60] sm:$0x7f]  ;;  %v106_v26 = vsub.s32 1, %v26_v22  ;;  %v111_v27 = vsub.s32 2, %v26_v22 }
   0x6   :  { %v281_v20 = vpack.c.bf16 %v23_v19, %v22_v18  ;;  %v117_v37 = vsub.s32 3, %v26_v22  ;;  %v201_v38 = vsub.s32 4, %v26_v22  ;;  %v196_v40 = vsub.s32 5, %v26_v22 }
   0x7   :  { %279 = vmatpush3.bf16.msra.mxu1 %v278_v17  ;;  %v28_v25 = vrot.slane %v24_v24, %v27_v23  ;;  %v107_v30 = vrot.slane %v24_v24, %v106_v26  ;;  %v112_v33 = vrot.slane %v24_v24, %v111_v27  ;;  %v210_v51 = vsub.s32 6, %v26_v22 }
   0x8   :  { %270 = vmatpush3.bf16.msra.mxu0 %v269_v7  ;;  %280 = vmatprep.subr.bf16.mxu1 %v286_v0  ;;  %v118_v39 = vrot.slane %v24_v24, %v117_v37  ;;  %v202_v42 = vrot.slane %v24_v24, %v201_v38  ;;  %v197_v44 = vrot.slane %v24_v24, %v196_v40 }
   0x9   :  { %271 = vmatprep.subr.bf16.mxu0 %v286_v0  ;;  %v211_v52 = vrot.slane %v24_v24, %v210_v51 }
   0xb   :  { %282 = vmatpush3.bf16.msra.mxu1 %v281_v20 }
   0xc   :  { %273 = vmatpush3.bf16.msra.mxu0 %v272_v10 }
   0xd   :  { %274 = vmatprep.subr.bf16.mxu0 %v286_v0 }
  0x10   :  { %276 = vmatpush3.bf16.msra.mxu0 %v275_v13 }
  0x13   :  { %252 = vmatmul.mubr.msk.f32.vlgmr.msra.gmra.mrb[0].mxu0 %vm29_vm1, %v11_v14 }
  0xe6   :  { %v99_v28 = vpop.f32.mrb[0].mxu0 }
  0xe7   :  { %v100_v29 = vadd.f32 %v99_v28, %v28_v25  ;;  %v253_v31 = vpop.f32.mrb[1].mxu0 }
  0xe9   :  { %v103_v32 = vmax.f32 %v100_v29, 0.0 }
  0xeb   :  { %v108_v34 = vmul.f32 %v107_v30, %v103_v32  ;;  %v203_v47 = vmul.f32 %v202_v42, %v103_v32 }
  0xed   :  { %v113_v35 = vadd.f32 %v112_v33, %v108_v34 }
  0xef   :  { %v114_v36 = vmax.f32 %v113_v35, 0.0 }
  0xf1   :  { %263 = vmatmul.mubr.msk.f32.vlgmr.msra.gmra.mrb[0].mxu1 %vm119_vm2, %v114_v36 }
 0x1c4   :  { %v189_v41 = vpop.f32.mrb[0].mxu1 }
 0x1c5   :  { %v190_v43 = vadd.f32 %v189_v41, %v118_v39  ;;  %v264_v45 = vpop.f32.mrb[1].mxu1 }
 0x1c7   :  { %v193_v46 = vmax.f32 %v190_v43, 0.0 }
 0x1c9   :  { %v198_v48 = vmul.f32 %v197_v44, %v193_v46 }
 0x1cb   :  { %v204_v49 = vadd.f32 %v203_v47, %v198_v48 }
 0x1cd   :  { %v205_v50 = vsel %vm119_vm2, %v204_v49, 0.0 }
 0x1ce   :  { %206 = vadd.xlane.f32.xlu0 %v205_v50 }
 0x25b   :  { %v207_v53 = vpop.xlane.xlu0 %206 }
 0x25c   :  { %v212_v54 = vadd.f32 %v211_v52, %v207_v53 }
 0x25e   :  { %214 = vst.msk [vmem:[%s353_s2] sm:$0xff] %vm213_vm3, %v212_v54 }

</bundles_post_ra>
